<compile_context>
chip_gen: v5e
topology: v5e:2x2
jax: 0.10.0
libtpu: 0.0.40
codegen_flags: <defaults>
</compile_context>

<pallas_src>
import functools

import numpy as np
import jax
import jax.numpy as jnp
from jax import lax
from jax.experimental import pallas as pl
from jax.experimental.pallas import tpu as pltpu


def _round_up(x, m):
    return ((x + m - 1) // m) * m


def _vmem_budget_bytes():
    """Generation-aware VMEM budget (v5e/v6e: 128 MiB phys, v7x: 64 MiB).
    Stay at <= half physical so Mosaic scratch / surrounding fusions keep headroom."""
    try:
        cap = int(pltpu.get_tpu_info().vmem_capacity_bytes)
    except Exception:
        cap = 128 * 1024 * 1024
    return int(min(cap // 2, 64 * 1024 * 1024))


def _pick_sim_tile(n, d, budget):
    """Largest square output tile whose double-buffered footprint
    (lhs bf16 + rhs bf16 + out f32) fits comfortably inside `budget`."""
    if n <= 128:
        return n
    for t in (1024, 512, 256, 128):
        if n % t != 0:
            continue
        foot = 2 * (2 * t * d * 2 + t * t * 4)      # double-buffered bytes
        if foot <= (budget * 3) // 4:
            return t
    return 128


def _pick_norm_tile(n, d, budget):
    """Row tile for the mem-bound normalize kernel, sized from D."""
    if n <= 128:
        return n
    for t in (512, 256, 128):
        if n % t == 0 and 2 * (t * d * 4 + t * d * 2) <= budget // 2:
            return t
    return 128


@functools.lru_cache(maxsize=None)
def _perm_table(batch_times_world, n_views):
    """perm[i,k] = source column of sim[i,:] for output column k in the
    torch-style [positives | negatives] layout (diag dropped).
    Only used for n_views != 2 (fast path below avoids any (N,N) gather)."""
    M = batch_times_world
    N = M * n_views
    i = np.arange(N)[:, None]
    j = np.arange(N)[None, :]
    is_pos = (j % M) == (i % M)
    key = np.where(i == j, 2 * N, np.where(is_pos, j, N + j))
    return np.argsort(key, axis=1)[:, : N - 1].astype(np.int32)


# ---------------- Pallas kernels ---------------------------------------------

def _normalize_kernel(x_ref, out_ref):
    """Row-wise L2 normalize (F.normalize semantics); single bf16 output."""
    x = x_ref[...].astype(jnp.float32)
    sumsq = jnp.sum(x * x, axis=1, keepdims=True)
    # x / max(||x||, 1e-12) == x * rsqrt(max(sumsq, 1e-24)); rsqrt is an EUP op.
    inv_norm = lax.rsqrt(jnp.maximum(sumsq, 1e-24))
    out_ref[...] = (x * inv_norm).astype(jnp.bfloat16)


def _sim_kernel(lhs_ref, rhs_ref, out_ref, *, inv_temperature):
    """(T,D) @ (T,D)^T on the MXU (bf16 in, f32 acc). 1/temperature folded
    into the f32 epilogue; global diagonal zeroed only on diagonal tiles."""
    acc = lax.dot_general(
        lhs_ref[...], rhs_ref[...],
        dimension_numbers=(((1,), (1,)), ((), ())),      # A @ B.T, MXU-native
        preferred_element_type=jnp.float32) * inv_temperature
    is_diag = pl.program_id(0) == pl.program_id(1)       # tm == tn required

    @pl.when(jnp.logical_not(is_diag))
    def _():
        out_ref[...] = acc

    @pl.when(is_diag)
    def _():
        r = lax.broadcasted_iota(jnp.int32, out_ref.shape, 0)
        c = lax.broadcasted_iota(jnp.int32, out_ref.shape, 1)
        out_ref[...] = jnp.where(r == c, 0.0, acc)


# ---------------- Wrapper -----------------------------------------------------

def infonce_loss_forward(features, *, temperature, batch_size, world_size=1,
                         flat=False, n_views=2):
    M = batch_size * world_size
    N = M * n_views
    D = features.shape[1]
    assert features.shape[0] == N, "features must be (n_views*batch*world, dim)"
    inv_t = 1.0 / float(temperature)

    budget = _vmem_budget_bytes()

    # Pad rows to a tile-friendly multiple (padded rows normalize to 0 and are
    # sliced away before the reorder) and pad D to a lane multiple so loads,
    # stores and MXU feeds are unmasked.
    n_pad = N if N <= 128 else _round_up(N, 128)
    d_pad = D if D % 128 == 0 else _round_up(D, 128)
    x = features
    if (n_pad, d_pad) != (N, D):
        x = jnp.pad(x, ((0, n_pad - N), (0, d_pad - D)))

    # 1) normalize once: O(N*D), mem-bound, D-aware independent row tile.
    tr = _pick_norm_tile(n_pad, d_pad, budget)
    xn = pl.pallas_call(
        _normalize_kernel,
        out_shape=jax.ShapeDtypeStruct((n_pad, d_pad), jnp.bfloat16),
        grid=(n_pad // tr,),
        in_specs=[pl.BlockSpec((tr, d_pad), lambda i: (i, 0))],
        out_specs=pl.BlockSpec((tr, d_pad), lambda i: (i, 0)),
        compiler_params=pltpu.CompilerParams(
            dimension_semantics=("parallel",),
            vmem_limit_bytes=budget),
    )(x)

    # 2) tiled similarity matmul A @ A.T (no wrapper transpose, no duplicated
    #    pre-scaled operand); both grid axes parallel (megacore-friendly).
    # TODO(synk): for very large D (>~4-8K on v7x) add a K grid axis with an
    # f32 VMEM accumulator instead of shrinking the output tile.
    t = _pick_sim_tile(n_pad, d_pad, budget)
    sim = pl.pallas_call(
        functools.partial(_sim_kernel, inv_temperature=inv_t),
        out_shape=jax.ShapeDtypeStruct((n_pad, n_pad), jnp.float32),
        grid=(n_pad // t, n_pad // t),
        in_specs=[pl.BlockSpec((t, d_pad), lambda i, j: (i, 0)),
                  pl.BlockSpec((t, d_pad), lambda i, j: (j, 0))],
        out_specs=pl.BlockSpec((t, t), lambda i, j: (i, j)),
        compiler_params=pltpu.CompilerParams(
            dimension_semantics=("parallel", "parallel"),
            vmem_limit_bytes=budget),
    )(xn, xn)

    if n_pad != N:
        sim = sim[:N, :N]

    # 3) [positives | negatives] layout (diagonal dropped). Already / T.
    if n_views == 2:
        # Fast path: per row i the two dropped columns are d1 = i % M and
        # d1 + M, and the single positive column is (i + M) % N -> two VPU
        # selects over shifted slices, no (N,N) lane-direction gather.
        rows = jnp.arange(N)
        positives = jnp.take_along_axis(sim, ((rows + M) % N)[:, None], axis=1)
        d1 = (rows % M)[:, None]
        k = jnp.arange(N - 2)[None, :]
        negatives = jnp.where(k < d1, sim[:, 0:N - 2],
                              jnp.where(k < d1 + M - 1, sim[:, 1:N - 1],
                                        sim[:, 2:N]))
    else:
        perm = jnp.asarray(_perm_table(M, n_views))          # cached host table
        logits_cat = jnp.take_along_axis(sim, perm, axis=1)
        positives = logits_cat[:, : n_views - 1]
        negatives = logits_cat[:, n_views - 1:]

    if flat:
        logits = negatives - jnp.sum(positives, axis=1, keepdims=True)
        labels = jnp.zeros_like(logits).at[:, : n_views - 1].set(1.0)
    else:
        logits = jnp.concatenate([positives, negatives], axis=1)
        labels = jnp.zeros((N,), dtype=jnp.int32)            # torch.long (x64 off)
    return logits, labels


# ---------------- Reference + test -------------------------------------------

def _reference_cat(features_np, temperature, M, n_views):
    """Pure-numpy transcription of the PyTorch forward (flat=False)."""
    N = M * n_views
    lab = np.concatenate([np.arange(M)] * n_views)
    L = lab[None, :] == lab[:, None]
    f = features_np.astype(np.float32)
    f = f / np.maximum(np.linalg.norm(f, axis=1, keepdims=True), 1e-12)
    S = f @ f.T
    off = ~np.eye(N, dtype=bool)
    L2 = L[off].reshape(N, -1)
    S2 = S[off].reshape(N, -1)
    pos = S2[L2].reshape(N, -1)
    neg = S2[~L2].reshape(N, -1)
    return np.concatenate([pos, neg], axis=1) / temperature


if __name__ == "__main__":
    temperature = 0.5
    batch_size, world_size, n_views = 4, 1, 2
    D = 32
    N = batch_size * world_size * n_views

    key = jax.random.PRNGKey(0)
    features = jax.random.normal(key, (N, D), dtype=jnp.float32)

    # non-flat path
    logits, labels = infonce_loss_forward(
        features, temperature=temperature, batch_size=batch_size,
        world_size=world_size, flat=False, n_views=n_views)
    logits = jax.block_until_ready(logits)
    labels = jax.block_until_ready(labels)

    ref_cat = _reference_cat(np.asarray(features), temperature,
                             batch_size * world_size, n_views)
    # bf16 MXU operands -> relaxed tolerance
    np.testing.assert_allclose(np.asarray(logits), ref_cat, rtol=2e-2, atol=2e-2)
    assert logits.shape == (N, N - 1)
    assert labels.shape == (N,) and int(np.asarray(labels).sum()) == 0

    # flat path
    logits_f, labels_f = infonce_loss_forward(
        features, temperature=temperature, batch_size=batch_size,
        world_size=world_size, flat=True, n_views=n_views)
    logits_f = jax.block_until_ready(logits_f)
    labels_f = jax.block_until_ready(labels_f)
    ref_flat = (ref_cat[:, n_views - 1:]
                - ref_cat[:, : n_views - 1].sum(axis=1, keepdims=True))
    np.testing.assert_allclose(np.asarray(logits_f), ref_flat, rtol=2e-2, atol=2e-2)
    assert np.asarray(labels_f)[:, : n_views - 1].min() == 1.0

    print("KERNEL_OK")
</pallas_src>

<mosaic_0001>
module attributes {stable_mosaic.version = 11 : i64} {
  func.func @_normalize_kernel(%arg0: i32, %arg1: memref<8x128xf32, #tpu.memory_space<vmem>>, %arg2: memref<8x128xbf16, #tpu.memory_space<vmem>>) attributes {dimension_semantics = [#tpu.dimension_semantics<parallel>], iteration_bounds = array<i64: 1>, scalar_prefetch = 0 : i64, scratch_operands = 0 : i64, tpu.core_type = #tpu.core_type<tc>, window_params = [{transform_indices = @transform_0, window_bounds = array<i64: 8, 128>}, {transform_indices = @transform_1, window_bounds = array<i64: 8, 128>}]} {
    %c0 = arith.constant 0 : index
    %c0_0 = arith.constant 0 : index
    %0 = vector.load %arg1[%c0, %c0_0] : memref<8x128xf32, #tpu.memory_space<vmem>>, vector<8x128xf32>
    %1 = arith.mulf %0, %0 : vector<8x128xf32>
    %cst = arith.constant dense<0.000000e+00> : vector<8xf32>
    %2 = vector.multi_reduction <add>, %1, %cst [1] : vector<8x128xf32> to vector<8xf32>
    %3 = vector.shape_cast %2 : vector<8xf32> to vector<8x1xf32>
    %cst_1 = arith.constant 1.000000e-24 : f32
    %4 = vector.broadcast %cst_1 : f32 to vector<8x1xf32>
    %5 = arith.maximumf %3, %4 : vector<8x1xf32>
    %6 = math.rsqrt %5 : vector<8x1xf32>
    %7 = vector.broadcast %6 : vector<8x1xf32> to vector<8x128xf32>
    %8 = arith.mulf %0, %7 : vector<8x128xf32>
    %9 = arith.truncf %8 : vector<8x128xf32> to vector<8x128xbf16>
    %c0_2 = arith.constant 0 : index
    %c0_3 = arith.constant 0 : index
    %10 = vector.load %arg2[%c0_2, %c0_3] : memref<8x128xbf16, #tpu.memory_space<vmem>>, vector<8x128xbf16>
    tpu.vector_store %arg2[%c0_2, %c0_3], %9 {strides = array<i32>} : memref<8x128xbf16, #tpu.memory_space<vmem>>, vector<8x128xbf16>,
    return
  }
  func.func @transform_0(%arg0: i32) -> (i32, i32) {
    %c0_i32 = arith.constant 0 : i32
    %c0_i32_0 = arith.constant 0 : i32
    return %arg0, %c0_i32 : i32, i32
  }
  func.func @transform_1(%arg0: i32) -> (i32, i32) {
    %c0_i32 = arith.constant 0 : i32
    %c0_i32_0 = arith.constant 0 : i32
    return %arg0, %c0_i32 : i32, i32
  }
}

</mosaic_0001>

<bundles_post_ra>
// kernel: tpu_custom_call.1
= control target key start
LH: loop header
LB: loop body
LE: loop exit
PB: predicated region body
PF: predicated region fallthrough
CT: control target
= control target key end

     0   :  { %6 = vsyncpa [#allocation3], 0  ;;  %s132_s0 = inlined_call_operand.hbm [shape: f32[8,128], index: 0, kind: input, shape index: {}]   ;;  %s133_s1 = inlined_call_operand.hbm [shape: bf16[8,128], index: 1, kind: output, shape index: {}]  }
   0x1   :  { %7 = vsyncpa [#allocation4], 0  ;;  %s13_s8 = sshll.u32 %s132_s0, 4  ;;  %s114_s9 = smov [#allocation2]   ;;  %s14_s8 = int_to_ptr.hbm [resolvable:$true] %s13_s8 }
   0x2   :  { %s15_s10 = sshll.u32 %s114_s9, 4  ;;  %s16_s10 = int_to_ptr.vmem [resolvable:$true] %s15_s10 }
   0x3   :  { %18 = dma.hbm_to_vmem [thread:$0]  %s14_s8, 128, %s16_s10, [#allocation3]  }
   0x4   :  { %110 = dma.done.wait [#allocation3], 128  }
   0x5   :  { %111 = vsyncadd [#allocation3], 4294967168  ;;  %v23_v0 = vld [vmem:[#allocation2] sm:$0xff]  ;;  %s115_s0 = smov [#allocation5]   ;;  %s48_s14 = sshll.u32 %s133_s1, 4  ;;  %s49_s14 = int_to_ptr.hbm [resolvable:$true] %s48_s14 }
   0x6   :  { %v24_v1 = vmul.f32 %v23_v0, %v23_v0  ;;  %s46_s11 = sshll.u32 %s115_s0, 4  ;;  %s47_s11 = int_to_ptr.vmem [resolvable:$true] %s46_s11 }
   0x8   :  { %25 = vadd.xlane.f32.xlu0 %v24_v1 }
  0x7b   :  { %v26_v2 = vpop.xlane.xlu0 %25 }
  0x7c   :  { %v27_v3 = vmax.f32 %v26_v2, 1e-24 }
  0x7e   :  { %60 = vrsqrt.f32 %v27_v3  ;;  %vm34_vm1 = vweird.f32 %v27_v3 }
  0x84   :  { %v61_v4 = vpop.eup %60 }
  0x85   :  { %v29_v5 = vmul.f32 %v61_v4, %v27_v3  ;;  %vm35_vm0 = vweird.f32 %v61_v4 }
  0x86   :  { %vm36_vm2 = vmor %vm34_vm1, %vm35_vm0 }
  0x87   :  { %v30_v6 = vmul.f32 %v61_v4, %v29_v5 }
  0x89   :  { %v31_v7 = vmul.f32 0.5, %v30_v6 }
  0x8b   :  { %v32_v8 = vsub.f32 1.5, %v31_v7 }
  0x8d   :  { %v33_v9 = vmul.f32 %v61_v4, %v32_v8 }
  0x8f   :  { %v37_v10 = vsel %vm36_vm2, %v61_v4, %v33_v9 }
  0x90   :  { %v38_v11 = vmul.f32 %v37_v10, %v23_v0 }
  0x92   :  { %v39_v12 = vpack.c.bf16 %v38_v11, %v38_v11 }
  0x94   :  { %40 = vst [vmem:[#allocation5] sm:$0xf] %v39_v12 }
  0x95   :  { %51 = dma.vmem_to_hbm [thread:$0]  %s47_s11, 64, %s49_s14, [#allocation4]  }
  0x96   :  { %112 = dma.done.wait [#allocation4], 64  }
  0x97   :  { %113 = vsyncadd [#allocation4], 4294967232 }
  0x98   :  { %56 = vsyncpa [#allocation3], 1 }
  0x99   :  { %57 = vsyncpa [#allocation4], 1 }

</bundles_post_ra>
